<compile_context>
chip_gen: v6e
topology: v6e:2x2x1
jax: 0.10.0
libtpu: 0.0.40
codegen_flags: <defaults>
</compile_context>

<pallas_src>
import functools

import jax
import jax.numpy as jnp
from jax.experimental import pallas as pl
from jax.experimental.pallas import tpu as pltpu


# ----------------------------------------------------------------------------
# Pallas kernel: full PLE forward (all levels, all tasks, all gates)
# ----------------------------------------------------------------------------
def _softmax_lastdim(logits):
    m = jnp.max(logits, axis=-1, keepdims=True)
    p = jnp.exp(logits - m)
    return p / jnp.sum(p, axis=-1, keepdims=True)


def _ple_kernel(*refs, num_tasks, n_es, n_sh, out_dims, num_level):
    """Grid-less kernel; all refs are whole arrays resident in VMEM.

    Refs (in order):
      x        : (B, D0)                      network input
      per level lvl (4 refs each):
        wt     : (T, D, n_es*E + n_es+n_sh)   task experts | task gate, fused
        bt     : (T, 1, n_es*E + n_es+n_sh)
        ws     : (D, n_sh*E [+ T*n_es+n_sh])  shared experts [| shared gate]
        bs     : (1, n_sh*E [+ T*n_es+n_sh])
      out      : (B, T*E_final)               lane-concatenated task outputs
    """
    x_ref = refs[0]
    out_ref = refs[-1]
    lvl_refs = refs[1:-1]
    T = num_tasks

    x_sh = x_ref[...]                       # (B, D0) shared stream
    x_tasks = [x_sh] * T                    # level 0: every task sees the input

    for lvl in range(num_level):            # static unroll over levels
        wt_ref, bt_ref, ws_ref, bs_ref = lvl_refs[4 * lvl:4 * lvl + 4]
        is_last = (lvl == num_level - 1)
        E = out_dims[lvl]

        # Shared stream: experts (+ gate logits on non-final levels) in ONE
        # fused (B, D) @ (D, n_sh*E [+ n_sel_s]) MXU matmul.
        h_cat_sh = (jnp.dot(x_sh, ws_ref[...],
                            preferred_element_type=jnp.float32)
                    + bs_ref[...])
        h_sh = jnp.maximum(h_cat_sh[:, :n_sh * E], 0.0)          # (B, n_sh*E)

        new_tasks = []
        h_tasks = []
        for t in range(T):                  # static unroll over tasks
            # Task t: experts + gate logits in ONE fused matmul.
            h_cat = (jnp.dot(x_tasks[t], wt_ref[t],
                             preferred_element_type=jnp.float32)
                     + bt_ref[t])                                # (B, n_es*E + n_sel_t)
            h_t = jnp.maximum(h_cat[:, :n_es * E], 0.0)          # (B, n_es*E)
            h_tasks.append(h_t)

            probs = _softmax_lastdim(h_cat[:, n_es * E:])        # (B, n_es+n_sh)

            # Weighted combine: static unrolled sum of E-wide column blocks.
            acc = probs[:, 0:1] * h_t[:, 0:E]
            for i in range(1, n_es):
                acc = acc + probs[:, i:i + 1] * h_t[:, i * E:(i + 1) * E]
            for j in range(n_sh):
                acc = acc + probs[:, n_es + j:n_es + j + 1] * h_sh[:, j * E:(j + 1) * E]
            new_tasks.append(acc)

        if not is_last:
            # Shared gate mixes ALL experts (every task's + shared); gate input
            # is the shared stream; expert outputs reused from above.
            probs = _softmax_lastdim(h_cat_sh[:, n_sh * E:])     # (B, T*n_es+n_sh)
            acc = None
            col = 0
            for t in range(T):
                for i in range(n_es):
                    term = probs[:, col:col + 1] * h_tasks[t][:, i * E:(i + 1) * E]
                    acc = term if acc is None else acc + term
                    col += 1
            for j in range(n_sh):
                acc = acc + probs[:, col:col + 1] * h_sh[:, j * E:(j + 1) * E]
                col += 1
            x_sh = acc

        x_tasks = new_tasks

    E_f = out_dims[-1]
    for t in range(T):
        out_ref[:, t * E_f:(t + 1) * E_f] = x_tasks[t]


# ----------------------------------------------------------------------------
# Wrapper: weight layout plumbing (done once) + single pallas_call forward
# ----------------------------------------------------------------------------
def _fuse_level_params(p, *, num_tasks, n_es, n_sh, is_last):
    """Stack experts along the output dim and lane-concat the gate weights."""
    T = num_tasks
    D = p['task_expert_W'].shape[2]
    E = p['task_expert_W'].shape[3]
    # Task experts (T, n_es, D, E) -> (T, D, n_es*E); concat task gate (T, D, n_sel_t).
    w_task = jnp.transpose(p['task_expert_W'], (0, 2, 1, 3)).reshape(T, D, n_es * E)
    b_task = p['task_expert_b'].reshape(T, 1, n_es * E)
    w_cat_t = jnp.concatenate([w_task, p['task_gate_W']], axis=-1)
    b_cat_t = jnp.concatenate([b_task, p['task_gate_b']], axis=-1)
    # Shared experts (n_sh, D, E) -> (D, n_sh*E); concat shared gate (non-final only).
    w_sh = jnp.transpose(p['shared_expert_W'], (1, 0, 2)).reshape(D, n_sh * E)
    b_sh = p['shared_expert_b'].reshape(1, n_sh * E)
    if not is_last:
        w_cat_s = jnp.concatenate([w_sh, p['shared_gate_W']], axis=-1)
        b_cat_s = jnp.concatenate([b_sh, p['shared_gate_b']], axis=-1)
    else:
        w_cat_s, b_cat_s = w_sh, b_sh
    return w_cat_t, b_cat_t, w_cat_s, b_cat_s


def prepare_ple_params(level_params, *, num_tasks, n_es, n_sh):
    """One-time fused weight layout; returns (flat arg list, per-level out dims)."""
    num_level = len(level_params)
    fused, out_dims = [], []
    for lvl, p in enumerate(level_params):
        is_last = (lvl == num_level - 1)
        out_dims.append(p['task_expert_W'].shape[-1])
        fused.extend(_fuse_level_params(p, num_tasks=num_tasks, n_es=n_es,
                                        n_sh=n_sh, is_last=is_last))
    return fused, tuple(out_dims)


def ple_forward(x, fused_params, out_dims, *, num_tasks, n_es, n_sh):
    """Single fused Pallas call for the whole PLE stack.

    x : (B, D0).  Returns list of num_tasks arrays of shape (B, E_final).
    """
    B = x.shape[0]
    num_level = len(out_dims)
    E_f = out_dims[-1]
    args = [x] + list(fused_params)

    kernel = functools.partial(
        _ple_kernel, num_tasks=num_tasks, n_es=n_es, n_sh=n_sh,
        out_dims=out_dims, num_level=num_level)

    out = pl.pallas_call(
        kernel,
        out_shape=jax.ShapeDtypeStruct((B, num_tasks * E_f), jnp.float32),
        in_specs=[pl.BlockSpec(memory_space=pltpu.MemorySpace.VMEM)] * len(args),
        out_specs=pl.BlockSpec(memory_space=pltpu.MemorySpace.VMEM),
    )(*args)

    return [out[:, t * E_f:(t + 1) * E_f] for t in range(num_tasks)]


# ----------------------------------------------------------------------------
# Pure-JAX reference (correctness check only)
# ----------------------------------------------------------------------------
def _cgc_level_ref(x_tasks, x_shared, p, *, n_es, n_sh, is_last):
    T = x_tasks.shape[0]
    h_tasks = [
        jnp.maximum(jnp.einsum('bd,nde->nbe', x_tasks[t], p['task_expert_W'][t])
                    + p['task_expert_b'][t], 0.0)
        for t in range(T)]                                       # each (n_es,B,E)
    h_sh = jnp.maximum(jnp.einsum('bd,nde->nbe', x_shared, p['shared_expert_W'])
                       + p['shared_expert_b'], 0.0)              # (n_sh, B, E)
    task_outs = []
    for t in range(T):
        h_all = jnp.concatenate([h_tasks[t], h_sh], axis=0)
        probs = jax.nn.softmax(
            x_tasks[t] @ p['task_gate_W'][t] + p['task_gate_b'][t], axis=-1)
        task_outs.append(jnp.einsum('bn,nbe->be', probs, h_all))
    task_outs = jnp.stack(task_outs, axis=0)
    if is_last:
        return task_outs, None
    h_all = jnp.concatenate(h_tasks + [h_sh], axis=0)
    probs = jax.nn.softmax(
        x_shared @ p['shared_gate_W'] + p['shared_gate_b'], axis=-1)
    return task_outs, jnp.einsum('bn,nbe->be', probs, h_all)


def ple_forward_ref(x, level_params, *, num_level, num_tasks, n_es, n_sh):
    x_tasks = jnp.broadcast_to(x[None], (num_tasks,) + x.shape)
    x_shared = x
    for lvl in range(num_level - 1):
        x_tasks, x_shared = _cgc_level_ref(x_tasks, x_shared, level_params[lvl],
                                           n_es=n_es, n_sh=n_sh, is_last=False)
    task_outs, _ = _cgc_level_ref(x_tasks, x_shared, level_params[-1],
                                  n_es=n_es, n_sh=n_sh, is_last=True)
    return [task_outs[t] for t in range(num_tasks)]


# ----------------------------------------------------------------------------
# Deterministic parameter init
# ----------------------------------------------------------------------------
def init_cgc_level(key, d_in, d_out, num_tasks, n_es, n_sh, is_last):
    ks = jax.random.split(key, 8)
    scale = 1.0 / jnp.sqrt(jnp.float32(d_in))
    n_sel_t = n_es + n_sh
    p = {
        'task_expert_W': jax.random.normal(
            ks[0], (num_tasks, n_es, d_in, d_out), jnp.float32) * scale,
        'task_expert_b': jax.random.normal(
            ks[1], (num_tasks, n_es, 1, d_out), jnp.float32) * 0.1,
        'shared_expert_W': jax.random.normal(
            ks[2], (n_sh, d_in, d_out), jnp.float32) * scale,
        'shared_expert_b': jax.random.normal(
            ks[3], (n_sh, 1, d_out), jnp.float32) * 0.1,
        'task_gate_W': jax.random.normal(
            ks[4], (num_tasks, d_in, n_sel_t), jnp.float32) * scale,
        'task_gate_b': jax.random.normal(
            ks[5], (num_tasks, 1, n_sel_t), jnp.float32) * 0.1,
    }
    if not is_last:
        n_sel_s = num_tasks * n_es + n_sh
        p['shared_gate_W'] = jax.random.normal(
            ks[6], (d_in, n_sel_s), jnp.float32) * scale
        p['shared_gate_b'] = jax.random.normal(
            ks[7], (1, n_sel_s), jnp.float32) * 0.1
    return p


if __name__ == "__main__":
    # small synthetic config
    B, D_IN = 8, 32          # batch, input embedding dim
    MID_DIM = 32             # mid_config: intermediate expert output dim
    TASK_DIM = 16            # task_config: final expert output dim
    NUM_TASKS = 2
    N_ES, N_SH = 2, 2        # experts per task / shared experts
    NUM_LEVEL = 2

    key = jax.random.PRNGKey(0)
    k_x, k_p = jax.random.split(key)
    x = jax.random.normal(k_x, (B, D_IN), jnp.float32)

    level_keys = jax.random.split(k_p, NUM_LEVEL)
    level_params = []
    d_in = D_IN
    for lvl in range(NUM_LEVEL):
        is_last = (lvl == NUM_LEVEL - 1)
        d_out = TASK_DIM if is_last else MID_DIM
        level_params.append(
            init_cgc_level(level_keys[lvl], d_in, d_out,
                           NUM_TASKS, N_ES, N_SH, is_last))
        d_in = d_out

    # One-time weight layout plumbing, then one fused pallas_call per forward.
    fused_params, out_dims = prepare_ple_params(
        level_params, num_tasks=NUM_TASKS, n_es=N_ES, n_sh=N_SH)

    fwd = jax.jit(functools.partial(
        ple_forward, out_dims=out_dims,
        num_tasks=NUM_TASKS, n_es=N_ES, n_sh=N_SH))

    outs = fwd(x, fused_params)
    outs = [jax.block_until_ready(o) for o in outs]

    # correctness check against a pure-JAX reference
    outs_ref = ple_forward_ref(x, level_params, num_level=NUM_LEVEL,
                               num_tasks=NUM_TASKS, n_es=N_ES, n_sh=N_SH)
    for o, r in zip(outs, outs_ref):
        assert o.shape == (B, TASK_DIM) and o.dtype == jnp.float32
        assert jnp.allclose(o, r, atol=1e-4, rtol=1e-4)

    print("KERNEL_OK")
</pallas_src>

<mosaic_0001>
module attributes {stable_mosaic.version = 11 : i64} {
  func.func @_ple_kernel(%arg0: memref<8x32xf32, #tpu.memory_space<vmem>>, %arg1: memref<2x32x68xf32, #tpu.memory_space<vmem>>, %arg2: memref<2x1x68xf32, #tpu.memory_space<vmem>>, %arg3: memref<32x70xf32, #tpu.memory_space<vmem>>, %arg4: memref<1x70xf32, #tpu.memory_space<vmem>>, %arg5: memref<2x32x36xf32, #tpu.memory_space<vmem>>, %arg6: memref<2x1x36xf32, #tpu.memory_space<vmem>>, %arg7: memref<32x32xf32, #tpu.memory_space<vmem>>, %arg8: memref<1x32xf32, #tpu.memory_space<vmem>>, %arg9: memref<8x32xf32, #tpu.memory_space<vmem>>) attributes {dimension_semantics = [], scalar_prefetch = 0 : i64, scratch_operands = 0 : i64, tpu.core_type = #tpu.core_type<tc>} {
    %c0 = arith.constant 0 : index
    %c0_0 = arith.constant 0 : index
    %0 = vector.load %arg0[%c0, %c0_0] : memref<8x32xf32, #tpu.memory_space<vmem>>, vector<8x32xf32>
    %c0_1 = arith.constant 0 : index
    %c0_2 = arith.constant 0 : index
    %1 = vector.load %arg3[%c0_1, %c0_2] : memref<32x70xf32, #tpu.memory_space<vmem>>, vector<32x70xf32>
    %cst = arith.constant dense<0.000000e+00> : vector<8x70xf32>
    %2 = tpu.matmul %0, %1, %cst {dimension_numbers = #tpu.dot_dimension_numbers<[1], [0], [0], [1], [0, 0, 1, 1], [], []>} : vector<8x32xf32>, vector<32x70xf32>, vector<8x70xf32> -> vector<8x70xf32>
    %c0_3 = arith.constant 0 : index
    %c0_4 = arith.constant 0 : index
    %3 = vector.load %arg4[%c0_3, %c0_4] : memref<1x70xf32, #tpu.memory_space<vmem>>, vector<1x70xf32>
    %4 = vector.broadcast %3 : vector<1x70xf32> to vector<8x70xf32>
    %5 = arith.addf %2, %4 : vector<8x70xf32>
    %6 = vector.extract_strided_slice %5 {offsets = [0, 0], sizes = [8, 64], strides = [1, 1]} : vector<8x70xf32> to vector<8x64xf32>
    %cst_5 = arith.constant 0.000000e+00 : f32
    %7 = vector.broadcast %cst_5 : f32 to vector<8x64xf32>
    %8 = arith.maximumf %6, %7 : vector<8x64xf32>
    %c0_6 = arith.constant 0 : index
    %c0_7 = arith.constant 0 : index
    %c0_8 = arith.constant 0 : index
    %9 = vector.load %arg1[%c0_6, %c0_7, %c0_8] : memref<2x32x68xf32, #tpu.memory_space<vmem>>, vector<1x32x68xf32>
    %10 = vector.shape_cast %9 : vector<1x32x68xf32> to vector<32x68xf32>
    %cst_9 = arith.constant dense<0.000000e+00> : vector<8x68xf32>
    %11 = tpu.matmul %0, %10, %cst_9 {dimension_numbers = #tpu.dot_dimension_numbers<[1], [0], [0], [1], [0, 0, 1, 1], [], []>} : vector<8x32xf32>, vector<32x68xf32>, vector<8x68xf32> -> vector<8x68xf32>
    %c0_10 = arith.constant 0 : index
    %c0_11 = arith.constant 0 : index
    %c0_12 = arith.constant 0 : index
    %12 = vector.load %arg2[%c0_10, %c0_11, %c0_12] : memref<2x1x68xf32, #tpu.memory_space<vmem>>, vector<1x1x68xf32>
    %13 = vector.shape_cast %12 : vector<1x1x68xf32> to vector<1x68xf32>
    %14 = vector.broadcast %13 : vector<1x68xf32> to vector<8x68xf32>
    %15 = arith.addf %11, %14 : vector<8x68xf32>
    %16 = vector.extract_strided_slice %15 {offsets = [0, 0], sizes = [8, 64], strides = [1, 1]} : vector<8x68xf32> to vector<8x64xf32>
    %cst_13 = arith.constant 0.000000e+00 : f32
    %17 = vector.broadcast %cst_13 : f32 to vector<8x64xf32>
    %18 = arith.maximumf %16, %17 : vector<8x64xf32>
    %19 = vector.extract_strided_slice %15 {offsets = [0, 64], sizes = [8, 4], strides = [1, 1]} : vector<8x68xf32> to vector<8x4xf32>
    %cst_14 = arith.constant dense<0xFF800000> : vector<8xf32>
    %20 = vector.multi_reduction <maximumf>, %19, %cst_14 [1] : vector<8x4xf32> to vector<8xf32>
    %21 = vector.shape_cast %20 : vector<8xf32> to vector<8x1xf32>
    %22 = vector.broadcast %21 : vector<8x1xf32> to vector<8x4xf32>
    %23 = arith.subf %19, %22 : vector<8x4xf32>
    %24 = math.exp %23 : vector<8x4xf32>
    %cst_15 = arith.constant dense<0.000000e+00> : vector<8xf32>
    %25 = vector.multi_reduction <add>, %24, %cst_15 [1] : vector<8x4xf32> to vector<8xf32>
    %26 = vector.shape_cast %25 : vector<8xf32> to vector<8x1xf32>
    %27 = vector.broadcast %26 : vector<8x1xf32> to vector<8x4xf32>
    %28 = arith.divf %24, %27 : vector<8x4xf32>
    %29 = vector.extract_strided_slice %28 {offsets = [0, 0], sizes = [8, 1], strides = [1, 1]} : vector<8x4xf32> to vector<8x1xf32>
    %30 = vector.extract_strided_slice %18 {offsets = [0, 0], sizes = [8, 32], strides = [1, 1]} : vector<8x64xf32> to vector<8x32xf32>
    %31 = vector.broadcast %29 : vector<8x1xf32> to vector<8x32xf32>
    %32 = arith.mulf %31, %30 : vector<8x32xf32>
    %33 = vector.extract_strided_slice %28 {offsets = [0, 1], sizes = [8, 1], strides = [1, 1]} : vector<8x4xf32> to vector<8x1xf32>
    %34 = vector.extract_strided_slice %18 {offsets = [0, 32], sizes = [8, 32], strides = [1, 1]} : vector<8x64xf32> to vector<8x32xf32>
    %35 = vector.broadcast %33 : vector<8x1xf32> to vector<8x32xf32>
    %36 = arith.mulf %35, %34 : vector<8x32xf32>
    %37 = arith.addf %32, %36 : vector<8x32xf32>
    %38 = vector.extract_strided_slice %28 {offsets = [0, 2], sizes = [8, 1], strides = [1, 1]} : vector<8x4xf32> to vector<8x1xf32>
    %39 = vector.extract_strided_slice %8 {offsets = [0, 0], sizes = [8, 32], strides = [1, 1]} : vector<8x64xf32> to vector<8x32xf32>
    %40 = vector.broadcast %38 : vector<8x1xf32> to vector<8x32xf32>
    %41 = arith.mulf %40, %39 : vector<8x32xf32>
    %42 = arith.addf %37, %41 : vector<8x32xf32>
    %43 = vector.extract_strided_slice %28 {offsets = [0, 3], sizes = [8, 1], strides = [1, 1]} : vector<8x4xf32> to vector<8x1xf32>
    %44 = vector.extract_strided_slice %8 {offsets = [0, 32], sizes = [8, 32], strides = [1, 1]} : vector<8x64xf32> to vector<8x32xf32>
    %45 = vector.broadcast %43 : vector<8x1xf32> to vector<8x32xf32>
    %46 = arith.mulf %45, %44 : vector<8x32xf32>
    %47 = arith.addf %42, %46 : vector<8x32xf32>
    %c1 = arith.constant 1 : index
    %c0_16 = arith.constant 0 : index
    %c0_17 = arith.constant 0 : index
    %48 = vector.load %arg1[%c1, %c0_16, %c0_17] : memref<2x32x68xf32, #tpu.memory_space<vmem>>, vector<1x32x68xf32>
    %49 = vector.shape_cast %48 : vector<1x32x68xf32> to vector<32x68xf32>
    %cst_18 = arith.constant dense<0.000000e+00> : vector<8x68xf32>
    %50 = tpu.matmul %0, %49, %cst_18 {dimension_numbers = #tpu.dot_dimension_numbers<[1], [0], [0], [1], [0, 0, 1, 1], [], []>} : vector<8x32xf32>, vector<32x68xf32>, vector<8x68xf32> -> vector<8x68xf32>
    %c1_19 = arith.constant 1 : index
    %c0_20 = arith.constant 0 : index
    %c0_21 = arith.constant 0 : index
    %51 = vector.load %arg2[%c1_19, %c0_20, %c0_21] : memref<2x1x68xf32, #tpu.memory_space<vmem>>, vector<1x1x68xf32>
    %52 = vector.shape_cast %51 : vector<1x1x68xf32> to vector<1x68xf32>
    %53 = vector.broadcast %52 : vector<1x68xf32> to vector<8x68xf32>
    %54 = arith.addf %50, %53 : vector<8x68xf32>
    %55 = vector.extract_strided_slice %54 {offsets = [0, 0], sizes = [8, 64], strides = [1, 1]} : vector<8x68xf32> to vector<8x64xf32>
    %cst_22 = arith.constant 0.000000e+00 : f32
    %56 = vector.broadcast %cst_22 : f32 to vector<8x64xf32>
    %57 = arith.maximumf %55, %56 : vector<8x64xf32>
    %58 = vector.extract_strided_slice %54 {offsets = [0, 64], sizes = [8, 4], strides = [1, 1]} : vector<8x68xf32> to vector<8x4xf32>
    %cst_23 = arith.constant dense<0xFF800000> : vector<8xf32>
    %59 = vector.multi_reduction <maximumf>, %58, %cst_23 [1] : vector<8x4xf32> to vector<8xf32>
    %60 = vector.shape_cast %59 : vector<8xf32> to vector<8x1xf32>
    %61 = vector.broadcast %60 : vector<8x1xf32> to vector<8x4xf32>
    %62 = arith.subf %58, %61 : vector<8x4xf32>
    %63 = math.exp %62 : vector<8x4xf32>
    %cst_24 = arith.constant dense<0.000000e+00> : vector<8xf32>
    %64 = vector.multi_reduction <add>, %63, %cst_24 [1] : vector<8x4xf32> to vector<8xf32>
    %65 = vector.shape_cast %64 : vector<8xf32> to vector<8x1xf32>
    %66 = vector.broadcast %65 : vector<8x1xf32> to vector<8x4xf32>
    %67 = arith.divf %63, %66 : vector<8x4xf32>
    %68 = vector.extract_strided_slice %67 {offsets = [0, 0], sizes = [8, 1], strides = [1, 1]} : vector<8x4xf32> to vector<8x1xf32>
    %69 = vector.extract_strided_slice %57 {offsets = [0, 0], sizes = [8, 32], strides = [1, 1]} : vector<8x64xf32> to vector<8x32xf32>
    %70 = vector.broadcast %68 : vector<8x1xf32> to vector<8x32xf32>
    %71 = arith.mulf %70, %69 : vector<8x32xf32>
    %72 = vector.extract_strided_slice %67 {offsets = [0, 1], sizes = [8, 1], strides = [1, 1]} : vector<8x4xf32> to vector<8x1xf32>
    %73 = vector.extract_strided_slice %57 {offsets = [0, 32], sizes = [8, 32], strides = [1, 1]} : vector<8x64xf32> to vector<8x32xf32>
    %74 = vector.broadcast %72 : vector<8x1xf32> to vector<8x32xf32>
    %75 = arith.mulf %74, %73 : vector<8x32xf32>
    %76 = arith.addf %71, %75 : vector<8x32xf32>
    %77 = vector.extract_strided_slice %67 {offsets = [0, 2], sizes = [8, 1], strides = [1, 1]} : vector<8x4xf32> to vector<8x1xf32>
    %78 = vector.extract_strided_slice %8 {offsets = [0, 0], sizes = [8, 32], strides = [1, 1]} : vector<8x64xf32> to vector<8x32xf32>
    %79 = vector.broadcast %77 : vector<8x1xf32> to vector<8x32xf32>
    %80 = arith.mulf %79, %78 : vector<8x32xf32>
    %81 = arith.addf %76, %80 : vector<8x32xf32>
    %82 = vector.extract_strided_slice %67 {offsets = [0, 3], sizes = [8, 1], strides = [1, 1]} : vector<8x4xf32> to vector<8x1xf32>
    %83 = vector.extract_strided_slice %8 {offsets = [0, 32], sizes = [8, 32], strides = [1, 1]} : vector<8x64xf32> to vector<8x32xf32>
    %84 = vector.broadcast %82 : vector<8x1xf32> to vector<8x32xf32>
    %85 = arith.mulf %84, %83 : vector<8x32xf32>
    %86 = arith.addf %81, %85 : vector<8x32xf32>
    %87 = vector.extract_strided_slice %5 {offsets = [0, 64], sizes = [8, 6], strides = [1, 1]} : vector<8x70xf32> to vector<8x6xf32>
    %cst_25 = arith.constant dense<0xFF800000> : vector<8xf32>
    %88 = vector.multi_reduction <maximumf>, %87, %cst_25 [1] : vector<8x6xf32> to vector<8xf32>
    %89 = vector.shape_cast %88 : vector<8xf32> to vector<8x1xf32>
    %90 = vector.broadcast %89 : vector<8x1xf32> to vector<8x6xf32>
    %91 = arith.subf %87, %90 : vector<8x6xf32>
    %92 = math.exp %91 : vector<8x6xf32>
    %cst_26 = arith.constant dense<0.000000e+00> : vector<8xf32>
    %93 = vector.multi_reduction <add>, %92, %cst_26 [1] : vector<8x6xf32> to vector<8xf32>
    %94 = vector.shape_cast %93 : vector<8xf32> to vector<8x1xf32>
    %95 = vector.broadcast %94 : vector<8x1xf32> to vector<8x6xf32>
    %96 = arith.divf %92, %95 : vector<8x6xf32>
    %97 = vector.extract_strided_slice %96 {offsets = [0, 0], sizes = [8, 1], strides = [1, 1]} : vector<8x6xf32> to vector<8x1xf32>
    %98 = vector.extract_strided_slice %18 {offsets = [0, 0], sizes = [8, 32], strides = [1, 1]} : vector<8x64xf32> to vector<8x32xf32>
    %99 = vector.broadcast %97 : vector<8x1xf32> to vector<8x32xf32>
    %100 = arith.mulf %99, %98 : vector<8x32xf32>
    %101 = vector.extract_strided_slice %96 {offsets = [0, 1], sizes = [8, 1], strides = [1, 1]} : vector<8x6xf32> to vector<8x1xf32>
    %102 = vector.extract_strided_slice %18 {offsets = [0, 32], sizes = [8, 32], strides = [1, 1]} : vector<8x64xf32> to vector<8x32xf32>
    %103 = vector.broadcast %101 : vector<8x1xf32> to vector<8x32xf32>
    %104 = arith.mulf %103, %102 : vector<8x32xf32>
    %105 = arith.addf %100, %104 : vector<8x32xf32>
    %106 = vector.extract_strided_slice %96 {offsets = [0, 2], sizes = [8, 1], strides = [1, 1]} : vector<8x6xf32> to vector<8x1xf32>
    %107 = vector.extract_strided_slice %57 {offsets = [0, 0], sizes = [8, 32], strides = [1, 1]} : vector<8x64xf32> to vector<8x32xf32>
    %108 = vector.broadcast %106 : vector<8x1xf32> to vector<8x32xf32>
    %109 = arith.mulf %108, %107 : vector<8x32xf32>
    %110 = arith.addf %105, %109 : vector<8x32xf32>
    %111 = vector.extract_strided_slice %96 {offsets = [0, 3], sizes = [8, 1], strides = [1, 1]} : vector<8x6xf32> to vector<8x1xf32>
    %112 = vector.extract_strided_slice %57 {offsets = [0, 32], sizes = [8, 32], strides = [1, 1]} : vector<8x64xf32> to vector<8x32xf32>
    %113 = vector.broadcast %111 : vector<8x1xf32> to vector<8x32xf32>
    %114 = arith.mulf %113, %112 : vector<8x32xf32>
    %115 = arith.addf %110, %114 : vector<8x32xf32>
    %116 = vector.extract_strided_slice %96 {offsets = [0, 4], sizes = [8, 1], strides = [1, 1]} : vector<8x6xf32> to vector<8x1xf32>
    %117 = vector.extract_strided_slice %8 {offsets = [0, 0], sizes = [8, 32], strides = [1, 1]} : vector<8x64xf32> to vector<8x32xf32>
    %118 = vector.broadcast %116 : vector<8x1xf32> to vector<8x32xf32>
    %119 = arith.mulf %118, %117 : vector<8x32xf32>
    %120 = arith.addf %115, %119 : vector<8x32xf32>
    %121 = vector.extract_strided_slice %96 {offsets = [0, 5], sizes = [8, 1], strides = [1, 1]} : vector<8x6xf32> to vector<8x1xf32>
    %122 = vector.extract_strided_slice %8 {offsets = [0, 32], sizes = [8, 32], strides = [1, 1]} : vector<8x64xf32> to vector<8x32xf32>
    %123 = vector.broadcast %121 : vector<8x1xf32> to vector<8x32xf32>
    %124 = arith.mulf %123, %122 : vector<8x32xf32>
    %125 = arith.addf %120, %124 : vector<8x32xf32>
    %c0_27 = arith.constant 0 : index
    %c0_28 = arith.constant 0 : index
    %126 = vector.load %arg7[%c0_27, %c0_28] : memref<32x32xf32, #tpu.memory_space<vmem>>, vector<32x32xf32>
    %cst_29 = arith.constant dense<0.000000e+00> : vector<8x32xf32>
    %127 = tpu.matmul %125, %126, %cst_29 {dimension_numbers = #tpu.dot_dimension_numbers<[1], [0], [0], [1], [0, 0, 1, 1], [], []>} : vector<8x32xf32>, vector<32x32xf32>, vector<8x32xf32> -> vector<8x32xf32>
    %c0_30 = arith.constant 0 : index
    %c0_31 = arith.constant 0 : index
    %128 = vector.load %arg8[%c0_30, %c0_31] : memref<1x32xf32, #tpu.memory_space<vmem>>, vector<1x32xf32>
    %129 = vector.broadcast %128 : vector<1x32xf32> to vector<8x32xf32>
    %130 = arith.addf %127, %129 : vector<8x32xf32>
    %cst_32 = arith.constant 0.000000e+00 : f32
    %131 = vector.broadcast %cst_32 : f32 to vector<8x32xf32>
    %132 = arith.maximumf %130, %131 : vector<8x32xf32>
    %c0_33 = arith.constant 0 : index
    %c0_34 = arith.constant 0 : index
    %c0_35 = arith.constant 0 : index
    %133 = vector.load %arg5[%c0_33, %c0_34, %c0_35] : memref<2x32x36xf32, #tpu.memory_space<vmem>>, vector<1x32x36xf32>
    %134 = vector.shape_cast %133 : vector<1x32x36xf32> to vector<32x36xf32>
    %cst_36 = arith.constant dense<0.000000e+00> : vector<8x36xf32>
    %135 = tpu.matmul %47, %134, %cst_36 {dimension_numbers = #tpu.dot_dimension_numbers<[1], [0], [0], [1], [0, 0, 1, 1], [], []>} : vector<8x32xf32>, vector<32x36xf32>, vector<8x36xf32> -> vector<8x36xf32>
    %c0_37 = arith.constant 0 : index
    %c0_38 = arith.constant 0 : index
    %c0_39 = arith.constant 0 : index
    %136 = vector.load %arg6[%c0_37, %c0_38, %c0_39] : memref<2x1x36xf32, #tpu.memory_space<vmem>>, vector<1x1x36xf32>
    %137 = vector.shape_cast %136 : vector<1x1x36xf32> to vector<1x36xf32>
    %138 = vector.broadcast %137 : vector<1x36xf32> to vector<8x36xf32>
    %139 = arith.addf %135, %138 : vector<8x36xf32>
    %140 = vector.extract_strided_slice %139 {offsets = [0, 0], sizes = [8, 32], strides = [1, 1]} : vector<8x36xf32> to vector<8x32xf32>
    %cst_40 = arith.constant 0.000000e+00 : f32
    %141 = vector.broadcast %cst_40 : f32 to vector<8x32xf32>
    %142 = arith.maximumf %140, %141 : vector<8x32xf32>
    %143 = vector.extract_strided_slice %139 {offsets = [0, 32], sizes = [8, 4], strides = [1, 1]} : vector<8x36xf32> to vector<8x4xf32>
    %cst_41 = arith.constant dense<0xFF800000> : vector<8xf32>
    %144 = vector.multi_reduction <maximumf>, %143, %cst_41 [1] : vector<8x4xf32> to vector<8xf32>
    %145 = vector.shape_cast %144 : vector<8xf32> to vector<8x1xf32>
    %146 = vector.broadcast %145 : vector<8x1xf32> to vector<8x4xf32>
    %147 = arith.subf %143, %146 : vector<8x4xf32>
    %148 = math.exp %147 : vector<8x4xf32>
    %cst_42 = arith.constant dense<0.000000e+00> : vector<8xf32>
    %149 = vector.multi_reduction <add>, %148, %cst_42 [1] : vector<8x4xf32> to vector<8xf32>
    %150 = vector.shape_cast %149 : vector<8xf32> to vector<8x1xf32>
    %151 = vector.broadcast %150 : vector<8x1xf32> to vector<8x4xf32>
    %152 = arith.divf %148, %151 : vector<8x4xf32>
    %153 = vector.extract_strided_slice %152 {offsets = [0, 0], sizes = [8, 1], strides = [1, 1]} : vector<8x4xf32> to vector<8x1xf32>
    %154 = vector.extract_strided_slice %142 {offsets = [0, 0], sizes = [8, 16], strides = [1, 1]} : vector<8x32xf32> to vector<8x16xf32>
    %155 = vector.broadcast %153 : vector<8x1xf32> to vector<8x16xf32>
    %156 = arith.mulf %155, %154 : vector<8x16xf32>
    %157 = vector.extract_strided_slice %152 {offsets = [0, 1], sizes = [8, 1], strides = [1, 1]} : vector<8x4xf32> to vector<8x1xf32>
    %158 = vector.extract_strided_slice %142 {offsets = [0, 16], sizes = [8, 16], strides = [1, 1]} : vector<8x32xf32> to vector<8x16xf32>
    %159 = vector.broadcast %157 : vector<8x1xf32> to vector<8x16xf32>
    %160 = arith.mulf %159, %158 : vector<8x16xf32>
    %161 = arith.addf %156, %160 : vector<8x16xf32>
    %162 = vector.extract_strided_slice %152 {offsets = [0, 2], sizes = [8, 1], strides = [1, 1]} : vector<8x4xf32> to vector<8x1xf32>
    %163 = vector.extract_strided_slice %132 {offsets = [0, 0], sizes = [8, 16], strides = [1, 1]} : vector<8x32xf32> to vector<8x16xf32>
    %164 = vector.broadcast %162 : vector<8x1xf32> to vector<8x16xf32>
    %165 = arith.mulf %164, %163 : vector<8x16xf32>
    %166 = arith.addf %161, %165 : vector<8x16xf32>
    %167 = vector.extract_strided_slice %152 {offsets = [0, 3], sizes = [8, 1], strides = [1, 1]} : vector<8x4xf32> to vector<8x1xf32>
    %168 = vector.extract_strided_slice %132 {offsets = [0, 16], sizes = [8, 16], strides = [1, 1]} : vector<8x32xf32> to vector<8x16xf32>
    %169 = vector.broadcast %167 : vector<8x1xf32> to vector<8x16xf32>
    %170 = arith.mulf %169, %168 : vector<8x16xf32>
    %171 = arith.addf %166, %170 : vector<8x16xf32>
    %c1_43 = arith.constant 1 : index
    %c0_44 = arith.constant 0 : index
    %c0_45 = arith.constant 0 : index
    %172 = vector.load %arg5[%c1_43, %c0_44, %c0_45] : memref<2x32x36xf32, #tpu.memory_space<vmem>>, vector<1x32x36xf32>
    %173 = vector.shape_cast %172 : vector<1x32x36xf32> to vector<32x36xf32>
    %cst_46 = arith.constant dense<0.000000e+00> : vector<8x36xf32>
    %174 = tpu.matmul %86, %173, %cst_46 {dimension_numbers = #tpu.dot_dimension_numbers<[1], [0], [0], [1], [0, 0, 1, 1], [], []>} : vector<8x32xf32>, vector<32x36xf32>, vector<8x36xf32> -> vector<8x36xf32>
    %c1_47 = arith.constant 1 : index
    %c0_48 = arith.constant 0 : index
    %c0_49 = arith.constant 0 : index
    %175 = vector.load %arg6[%c1_47, %c0_48, %c0_49] : memref<2x1x36xf32, #tpu.memory_space<vmem>>, vector<1x1x36xf32>
    %176 = vector.shape_cast %175 : vector<1x1x36xf32> to vector<1x36xf32>
    %177 = vector.broadcast %176 : vector<1x36xf32> to vector<8x36xf32>
    %178 = arith.addf %174, %177 : vector<8x36xf32>
    %179 = vector.extract_strided_slice %178 {offsets = [0, 0], sizes = [8, 32], strides = [1, 1]} : vector<8x36xf32> to vector<8x32xf32>
    %cst_50 = arith.constant 0.000000e+00 : f32
    %180 = vector.broadcast %cst_50 : f32 to vector<8x32xf32>
    %181 = arith.maximumf %179, %180 : vector<8x32xf32>
    %182 = vector.extract_strided_slice %178 {offsets = [0, 32], sizes = [8, 4], strides = [1, 1]} : vector<8x36xf32> to vector<8x4xf32>
    %cst_51 = arith.constant dense<0xFF800000> : vector<8xf32>
    %183 = vector.multi_reduction <maximumf>, %182, %cst_51 [1] : vector<8x4xf32> to vector<8xf32>
    %184 = vector.shape_cast %183 : vector<8xf32> to vector<8x1xf32>
    %185 = vector.broadcast %184 : vector<8x1xf32> to vector<8x4xf32>
    %186 = arith.subf %182, %185 : vector<8x4xf32>
    %187 = math.exp %186 : vector<8x4xf32>
    %cst_52 = arith.constant dense<0.000000e+00> : vector<8xf32>
    %188 = vector.multi_reduction <add>, %187, %cst_52 [1] : vector<8x4xf32> to vector<8xf32>
    %189 = vector.shape_cast %188 : vector<8xf32> to vector<8x1xf32>
    %190 = vector.broadcast %189 : vector<8x1xf32> to vector<8x4xf32>
    %191 = arith.divf %187, %190 : vector<8x4xf32>
    %192 = vector.extract_strided_slice %191 {offsets = [0, 0], sizes = [8, 1], strides = [1, 1]} : vector<8x4xf32> to vector<8x1xf32>
    %193 = vector.extract_strided_slice %181 {offsets = [0, 0], sizes = [8, 16], strides = [1, 1]} : vector<8x32xf32> to vector<8x16xf32>
    %194 = vector.broadcast %192 : vector<8x1xf32> to vector<8x16xf32>
    %195 = arith.mulf %194, %193 : vector<8x16xf32>
    %196 = vector.extract_strided_slice %191 {offsets = [0, 1], sizes = [8, 1], strides = [1, 1]} : vector<8x4xf32> to vector<8x1xf32>
    %197 = vector.extract_strided_slice %181 {offsets = [0, 16], sizes = [8, 16], strides = [1, 1]} : vector<8x32xf32> to vector<8x16xf32>
    %198 = vector.broadcast %196 : vector<8x1xf32> to vector<8x16xf32>
    %199 = arith.mulf %198, %197 : vector<8x16xf32>
    %200 = arith.addf %195, %199 : vector<8x16xf32>
    %201 = vector.extract_strided_slice %191 {offsets = [0, 2], sizes = [8, 1], strides = [1, 1]} : vector<8x4xf32> to vector<8x1xf32>
    %202 = vector.extract_strided_slice %132 {offsets = [0, 0], sizes = [8, 16], strides = [1, 1]} : vector<8x32xf32> to vector<8x16xf32>
    %203 = vector.broadcast %201 : vector<8x1xf32> to vector<8x16xf32>
    %204 = arith.mulf %203, %202 : vector<8x16xf32>
    %205 = arith.addf %200, %204 : vector<8x16xf32>
    %206 = vector.extract_strided_slice %191 {offsets = [0, 3], sizes = [8, 1], strides = [1, 1]} : vector<8x4xf32> to vector<8x1xf32>
    %207 = vector.extract_strided_slice %132 {offsets = [0, 16], sizes = [8, 16], strides = [1, 1]} : vector<8x32xf32> to vector<8x16xf32>
    %208 = vector.broadcast %206 : vector<8x1xf32> to vector<8x16xf32>
    %209 = arith.mulf %208, %207 : vector<8x16xf32>
    %210 = arith.addf %205, %209 : vector<8x16xf32>
    %c0_53 = arith.constant 0 : index
    %c0_54 = arith.constant 0 : index
    %211 = vector.load %arg9[%c0_53, %c0_54] : memref<8x32xf32, #tpu.memory_space<vmem>>, vector<8x16xf32>
    tpu.vector_store %arg9[%c0_53, %c0_54], %171 {strides = array<i32>} : memref<8x32xf32, #tpu.memory_space<vmem>>, vector<8x16xf32>,
    %c0_55 = arith.constant 0 : index
    %c16 = arith.constant 16 : index
    %212 = vector.load %arg9[%c0_55, %c16] : memref<8x32xf32, #tpu.memory_space<vmem>>, vector<8x16xf32>
    tpu.vector_store %arg9[%c0_55, %c16], %210 {strides = array<i32>} : memref<8x32xf32, #tpu.memory_space<vmem>>, vector<8x16xf32>,
    return
  }
}

</mosaic_0001>

<bundles_post_ra>
// kernel: ple_forward.1
= control target key start
LH: loop header
LB: loop body
LE: loop exit
PB: predicated region body
PF: predicated region fallthrough
CT: control target
= control target key end

     0   :  { %14 = vsyncpa [#allocation3], 0  ;;  %s1381_s0 = inlined_call_operand.hbm [shape: f32[8,32], index: 0, kind: input, shape index: {}]   ;;  %s1382_s1 = inlined_call_operand.hbm [shape: f32[2,32,68], index: 1, kind: input, shape index: {}]   ;;  %s1383_s2 = inlined_call_operand.vmem [shape: f32[2,1,68], index: 2, kind: input, shape index: {}]   ;;  %s1384_s3 = inlined_call_operand.hbm [shape: f32[32,70], index: 3, kind: input, shape index: {}]   ;;  %s1385_s4 = inlined_call_operand.vmem [shape: f32[1,70], index: 4, kind: input, shape index: {}]   ;;  %s1386_s5 = inlined_call_operand.hbm [shape: f32[2,32,36], index: 5, kind: input, shape index: {}]   ;;  %s1387_s6 = inlined_call_operand.vmem [shape: f32[2,1,36], index: 6, kind: input, shape index: {}]   ;;  %s1388_s7 = inlined_call_operand.hbm [shape: f32[32,32], index: 7, kind: input, shape index: {}]   ;;  %s1389_s8 = inlined_call_operand.vmem [shape: f32[1,32], index: 8, kind: input, shape index: {}]   ;;  %s1390_s9 = inlined_call_operand.vmem [shape: f32[8,32], index: 9, kind: output, shape index: {}]  }
   0x1   :  { %15 = vsyncpa [#allocation5], 0 }
   0x2   :  { %16 = vsyncpa [#allocation8], 0  ;;  %s1160_s30 = smov [#allocation4]  }
   0x3   :  { %s32_s10 = sshll.u32 %s1160_s30, 4  ;;  %s33_s10 = int_to_ptr.vmem [resolvable:$true] %s32_s10 }
   0x4   :  { %s1062_s11 = scalar_lea.vmem %s33_s10, 1024  ;;  %p1067_p1 = scmp.lt.s32.totalorder %s33_s10, %s33_s10 }
   0x5   :  { %p1063_p0 = scmp.ne.s32.totalorder %s33_s10, %s1062_s11  ;;  %p1068_p2 = scmp.lt.s32.totalorder %s1062_s11, %s1062_s11 }
   0x7   :  { %p1069_p3 = por %p1068_p2, %p1067_p1 }
   0x9   :  { %p1070_p4 = pnand %p1069_p3, %p1063_p0 }
   0xb   :  { %1073 = shalt.err (!%p1070_p4)
}
   0xc   :  { %s1161_s12 = smov 128   ;;  %s1162_s13 = smov 8  }
   0xd   :  { %38 = dma.hbm_to_vmem [thread:$0]  %s1382_s1, 1024, %s33_s10, [#allocation5], %s1161_s12, %s1161_s12, %s1162_s13  }
   0xe   :  { %s1163_s16 = smov [#allocation7]   ;;  %s1164_s18 = smov [#allocation2]  }
   0xf   :  { %s60_s17 = sshll.u32 %s1163_s16, 4  ;;  %s23_s19 = sshll.u32 %s1164_s18, 4  ;;  %s61_s17 = int_to_ptr.vmem [resolvable:$true] %s60_s17  ;;  %s24_s19 = int_to_ptr.vmem [resolvable:$true] %s23_s19 }
  0x10   :  { %s1082_s20 = scalar_lea.vmem %s61_s17, 1024  ;;  %p1087_p6 = scmp.lt.s32.totalorder %s61_s17, %s61_s17 }
  0x11   :  { %p1083_p5 = scmp.ne.s32.totalorder %s61_s17, %s1082_s20  ;;  %p1088_p7 = scmp.lt.s32.totalorder %s1082_s20, %s1082_s20 }
  0x13   :  { %p1089_p8 = por %p1088_p7, %p1087_p6 }
  0x15   :  { %p1090_p9 = pnand %p1089_p8, %p1083_p5 }
  0x17   :  { %1093 = shalt.err (!%p1090_p9)
}
  0x18   :  { %66 = dma.hbm_to_vmem [thread:$0]  %s1386_s5, 1024, %s61_s17, [#allocation8], %s1161_s12, %s1161_s12, %s1162_s13  }
  0x19   :  { %s1102_s1 = scalar_lea.vmem %s24_s19, 128  ;;  %p1107_p11 = scmp.lt.s32.totalorder %s24_s19, %s24_s19 }
  0x1a   :  { %p1103_p10 = scmp.ne.s32.totalorder %s24_s19, %s1102_s1  ;;  %p1108_p12 = scmp.lt.s32.totalorder %s1102_s1, %s1102_s1 }
  0x1c   :  { %p1109_p13 = por %p1108_p12, %p1107_p11 }
  0x1e   :  { %p1110_p0 = pnand %p1109_p13, %p1103_p10 }
  0x20   :  { %1113 = shalt.err (!%p1110_p0)
}
  0x21   :  { %26 = dma.hbm_to_vmem [thread:$0]  %s1381_s0, 128, %s24_s19, [#allocation3]  }
  0x22   :  { %s1165_s25 = smov [#allocation6]   ;;  %s1166_s27 = smov [#allocation9]  }
  0x23   :  { %s46_s26 = sshll.u32 %s1165_s25, 4  ;;  %s74_s28 = sshll.u32 %s1166_s27, 4  ;;  %s47_s26 = int_to_ptr.vmem [resolvable:$true] %s46_s26  ;;  %s75_s28 = int_to_ptr.vmem [resolvable:$true] %s74_s28 }
  0x24   :  { %s1122_s29 = scalar_lea.vmem %s47_s26, 512  ;;  %p1127_p2 = scmp.lt.s32.totalorder %s47_s26, %s47_s26 }
  0x25   :  { %p1123_p1 = scmp.ne.s32.totalorder %s47_s26, %s1122_s29  ;;  %p1128_p3 = scmp.lt.s32.totalorder %s1122_s29, %s1122_s29 }
  0x27   :  { %p1129_p4 = por %p1128_p3, %p1127_p2 }
  0x29   :  { %p1130_p5 = pnand %p1129_p4, %p1123_p1 }
  0x2b   :  { %1133 = shalt.err (!%p1130_p5)
}
  0x2c   :  { %52 = dma.hbm_to_vmem [thread:$0]  %s1384_s3, 512, %s47_s26, [#allocation5], %s1161_s12, %s1161_s12, %s1162_s13  }
  0x2d   :  { %s1142_s0 = scalar_lea.vmem %s75_s28, 512  ;;  %p1147_p7 = scmp.lt.s32.totalorder %s75_s28, %s75_s28 }
  0x2e   :  { %p1143_p6 = scmp.ne.s32.totalorder %s75_s28, %s1142_s0  ;;  %p1148_p8 = scmp.lt.s32.totalorder %s1142_s0, %s1142_s0 }
  0x30   :  { %p1149_p9 = por %p1148_p8, %p1147_p7 }
  0x32   :  { %p1150_p10 = pnand %p1149_p9, %p1143_p6 }
  0x34   :  { %1153 = shalt.err (!%p1150_p10)
}
  0x35   :  { %80 = dma.hbm_to_vmem [thread:$0]  %s1388_s7, 512, %s75_s28, [#allocation8], %s1161_s12, %s1161_s12, %s1162_s13  }
  0x36   :  { %1154 = dma.done.wait [#allocation3], 128  }
  0x37   :  { %1155 = vsyncadd [#allocation3], 4294967168 }
  0x38   :  { %1156 = dma.done.wait [#allocation5], 1536  }
  0x39   :  { %1157 = vsyncadd [#allocation5], 4294965760 }
  0x3a   :  { %1158 = dma.done.wait [#allocation8], 1536  }
  0x3b   :  { %1159 = vsyncadd [#allocation8], 4294965760  ;;  %v1167_v0 = vmov 0.0   ;;  %vm1168_vm0 = vmmov 0   ;;  %v102_v1 = vld [vmem:[#allocation6 + $0x18] sm:$0xff]  ;;  %v101_v3 = vld [vmem:[#allocation6 + $0x10] sm:$0xff] }
  0x3c   :  { %923 = vmatprep.subr.mxu0 %v1167_v0  ;;  %934 = vmatprep.subr.mxu1 %v1167_v0  ;;  %v188_v2 = vld [vmem:[#allocation4 + $0x18] sm:$0xff]  ;;  %v187_v4 = vld [vmem:[#allocation4 + $0x10] sm:$0xff]  ;;  %v100_v5 = vld [vmem:[#allocation6 + $0x8] sm:$0xff]  ;;  %vm110_vm1 = vcmask 261120   ;;  %vm267_vm2 = vcmask 556544   ;;  %vm447_vm3 = vcmask 572928  }
  0x3d   :  { %931 = vmatprep.mubr.msk.f32.mxu0 %vm1168_vm0, %v1167_v0  ;;  %942 = vmatprep.mubr.msk.f32.mxu1 %vm1168_vm0, %v1167_v0  ;;  %v186_v6 = vld [vmem:[#allocation4 + $0x8] sm:$0xff]  ;;  %v99_v7 = vld [vmem:[#allocation6] sm:$0xff]  ;;  %v98_v9 = vld [vmem:[#allocation2] sm:$0xff]  ;;  %vm458_vm4 = vcmask 48128   ;;  %vm278_vm5 = vcmask 31744   ;;  %v1170_v47 = vmov 67  }
  0x3e   :  { %924 = vmatpush3.msra.mxu0 %v102_v1  ;;  %935 = vmatpush3.msra.mxu1 %v188_v2  ;;  %v185_v8 = vld [vmem:[#allocation4] sm:$0xff]  ;;  %v320_v10 = vld [vmem:[#allocation4 + $0x38] sm:$0xff]  ;;  %v319_v11 = vld [vmem:[#allocation4 + $0x30] sm:$0xff]  ;;  %v1171_v48 = vmov 65   ;;  %v1172_v54 = vmov 69   ;;  %v1173_v55 = vmov 64  }
  0x3f   :  { %925 = vmatprep.subr.mxu0 %v1167_v0  ;;  %936 = vmatprep.subr.mxu1 %v1167_v0  ;;  %v318_v12 = vld [vmem:[#allocation4 + $0x28] sm:$0xff]  ;;  %v317_v13 = vld [vmem:[#allocation4 + $0x20] sm:$0xff]  ;;  %v879_v14 = vld [vmem:[%s1385_s4] ss:$0 sm:$0xff]  ;;  %v1174_v60 = vmov 66   ;;  %v1175_v61 = vmov 68  }
  0x40   :  { %926 = vmatpush3.msra.mxu0 %v101_v3  ;;  %937 = vmatpush3.msra.mxu1 %v187_v4  ;;  %v881_v15 = vld [vmem:[%s1383_s2] ss:$0 sm:$0xff]  ;;  %v884_v24 = vld [vmem:[%s1383_s2 + $0x1] ss:$0 sm:$0xff]  ;;  %s1169_s2 = smov 64   ;;  %v514_v63 = vld [vmem:[#allocation9 + $0x10] sm:$0xff] }
  0x41   :  { %927 = vmatprep.subr.mxu0 %v1167_v0  ;;  %938 = vmatprep.subr.mxu1 %v1167_v0  ;;  %v515_v62 = vld [vmem:[#allocation9 + $0x18] sm:$0xff]  ;;  %v513_v1 = vld [vmem:[#allocation9 + $0x8] sm:$0xff]  ;;  %v512_v2 = vld [vmem:[#allocation9] sm:$0xff]  ;;  %s1176_s15 = smov 96   ;;  %vm682_vm6 = vcmask 294144   ;;  %s1181_s21 = smov 112  }
  0x42   :  { %928 = vmatpush3.msra.mxu0 %v100_v5  ;;  %939 = vmatpush3.msra.mxu1 %v186_v6  ;;  %vm864_vm7 = vcmask 130048   ;;  %s1182_s1 = smov 16   ;;  %vm870_vm8 = vcmask 261248  }
  0x43   :  { %929 = vmatprep.subr.mxu0 %v1167_v0  ;;  %940 = vmatprep.subr.mxu1 %v1167_v0 }
  0x44   :  { %930 = vmatpush3.msra.mxu0 %v99_v7  ;;  %941 = vmatpush3.msra.mxu1 %v185_v8 }
  0x45   :  { %932 = vmatmul.mubr.msk.f32.vlgmr.msra.gmra.mxu0 %vm110_vm1, %v98_v9  ;;  %943 = vmatmul.mubr.msk.f32.vlgmr.msra.gmra.mxu1 %vm110_vm1, %v98_v9 }
  0x46   :  { %945 = vmatprep.subr.mxu0 %v1167_v0  ;;  %953 = vmatprep.mubr.msk.f32.mxu0 %vm1168_vm0, %v1167_v0 }
  0x47   :  { %946 = vmatpush3.msra.mxu0 %v320_v10  ;;  %956 = vmatprep.subr.mxu1 %v1167_v0 }
  0x48   :  { %947 = vmatprep.subr.mxu0 %v1167_v0  ;;  %964 = vmatprep.mubr.msk.f32.mxu1 %vm1168_vm0, %v1167_v0 }
  0x49   :  { %948 = vmatpush3.msra.mxu0 %v319_v11  ;;  %1013 = vset.pattern.permute.xlu0 %v1170_v47 }
  0x4a   :  { %949 = vmatprep.subr.mxu0 %v1167_v0  ;;  %1012 = vset.pattern.permute.xlu1 %v1171_v48 }
  0x4b   :  { %950 = vmatpush3.msra.mxu0 %v318_v12  ;;  %957 = vmatpush3.msra.mxu1 %v515_v62 }
  0x4c   :  { %951 = vmatprep.subr.mxu0 %v1167_v0  ;;  %958 = vmatprep.subr.mxu1 %v1167_v0 }
  0x4d   :  { %952 = vmatpush3.msra.mxu0 %v317_v13  ;;  %959 = vmatpush3.msra.mxu1 %v514_v63 }
  0x4e   :  { %954 = vmatmul.mubr.msk.f32.vlgmr.msra.gmra.mxu0 %vm110_vm1, %v98_v9  ;;  %967 = vmatprep.subr.mxu0 %v1167_v0 }
  0x4f   :  { %975 = vmatprep.mubr.msk.f32.mxu0 %vm1168_vm0, %v1167_v0  ;;  %960 = vmatprep.subr.mxu1 %v1167_v0 }
  0x50   :  { %961 = vmatpush3.msra.mxu1 %v513_v1 }
  0x51   :  { %962 = vmatprep.subr.mxu1 %v1167_v0 }
  0x52   :  { %963 = vmatpush3.msra.mxu1 %v512_v2 }
  0x53   :  { %978 = vmatprep.subr.mxu1 %v1167_v0 }
 0x105   :  { %v180_v16 = vpop.f32.mrf.mxu0  ;;  %v262_v17 = vpop.f32.mrf.mxu1 }
 0x106   :  { %v1293_v18 = vadd.f32 %v879_v14, %v180_v16  ;;  %v1295_v19 = vadd.f32 %v881_v15, %v262_v17 }
 0x107   :  { %v933_v20 = vpop.f32.mrf.mxu0  ;;  %v944_v21 = vpop.f32.mrf.mxu1 }
 0x108   :  { %v268_v22 = vsel %vm267_vm2, %v1295_v19, -inf  ;;  %v448_v23 = vsel %vm447_vm3, %v1293_v18, -inf  ;;  %v1314_v3 = vmax.f32 %v1295_v19, 0.0  ;;  %v1321_v10 = vmax.f32 %v1293_v18, 0.0  ;;  %v599_v21 = vld [vmem:[#allocation7 + $0x10] sm:$0xff] }
 0x109   :  { %269 = vmax.xlane.f32.xlu1 %v268_v22  ;;  %449 = vmax.xlane.f32.xlu0 %v448_v23  ;;  %v598_v22 = vld [vmem:[#allocation7 + $0x8] sm:$0xff] }
 0x10e   :  { %v395_v25 = vpop.f32.mrf.mxu0 }
 0x10f   :  { %v1302_v26 = vadd.f32 %v884_v24, %v395_v25  ;;  %v597_v24 = vld [vmem:[#allocation7] sm:$0xff] }
 0x110   :  { %v955_v27 = vpop.f32.mrf.mxu0 }
 0x111   :  { %v400_v28 = vsel %vm267_vm2, %v1302_v26, -inf  ;;  %v399_v7 = vmax.f32 %v1302_v26, 0.0 }
 0x112   :  { %401 = vmax.xlane.f32.xlu0 %v400_v28 }
 0x192   :  { %v450_v29 = vpop.xlane.xlu0 %449  ;;  %v270_v32 = vpop.xlane.xlu1 %269 }
 0x193   :  { %v451_v30 = vsub.f32 %v1293_v18, %v450_v29  ;;  %v271_v34 = vsub.f32 %v1295_v19, %v270_v32  ;;  %v600_v19 = vld [vmem:[#allocation7 + $0x18] sm:$0xff] }
 0x194   :  { %968 = vmatpush3.msra.mxu0 %v600_v19  ;;  %v1177_v19 = vmov 33  }
 0x195   :  { %v452_v31 = vmul.f32 1.442695, %v451_v30  ;;  %v272_v37 = vmul.f32 1.442695, %v271_v34  ;;  %969 = vmatprep.subr.mxu0 %v1167_v0 }
 0x196   :  { %970 = vmatpush3.msra.mxu0 %v599_v21  ;;  %v1178_v21 = vmov 32  }
 0x197   :  { %1034 = vpow2.f32 %v452_v31  ;;  %971 = vmatprep.subr.mxu0 %v1167_v0 }
 0x198   :  { %972 = vmatpush3.msra.mxu0 %v598_v22 }
 0x199   :  { %973 = vmatprep.subr.mxu0 %v1167_v0 }
 0x19a   :  { %974 = vmatpush3.msra.mxu0 %v597_v24 }
 0x19b   :  { %v402_v33 = vpop.xlane.xlu0 %401 }
 0x19c   :  { %v403_v35 = vsub.f32 %v1302_v26, %v402_v33 }
 0x19e   :  { %v404_v36 = vmul.f32 1.442695, %v403_v35 }
 0x1a0   :  { %1036 = vpow2.f32 %v404_v36 }
 0x1a1   :  { %1038 = vpow2.f32 %v272_v37 }
 0x1a4   :  { %v1035_v38 = vpop.eup %1034 }
 0x1a5   :  { %455 = vrot.lane.b32.xlu1 %v1035_v38, %s1169_s2 }
 0x1ad   :  { %v1037_v39 = vpop.eup %1036 }
 0x1ae   :  { %407 = vrot.lane.b32.xlu0 %v1037_v39, %s1169_s2  ;;  %v1039_v40 = vpop.eup %1038 }
 0x1b2   :  { %275 = vrot.lane.b32.xlu0 %v1039_v40, %s1169_s2 }
 0x217   :  { %v456_v41 = vpop.permute.xlu1 %455 }
 0x218   :  { %v459_v42 = vsel %vm458_vm4, %v456_v41, 0.0  ;;  %v734_v41 = vld [vmem:[#allocation7 + $0x38] sm:$0xff] }
 0x219   :  { %460 = vadd.xlane.f32.xlu1 %v459_v42  ;;  %v733_v42 = vld [vmem:[#allocation7 + $0x30] sm:$0xff] }
 0x220   :  { %v408_v43 = vpop.permute.xlu0 %407 }
 0x221   :  { %v410_v44 = vsel %vm278_vm5, %v408_v43, 0.0 }
 0x222   :  { %411 = vadd.xlane.f32.xlu0 %v410_v44 }
 0x224   :  { %v276_v45 = vpop.permute.xlu0 %275 }
 0x225   :  { %v279_v46 = vsel %vm278_vm5, %v276_v45, 0.0 }
 0x226   :  { %280 = vadd.xlane.f32.xlu1 %v279_v46  ;;  %v732_v46 = vld [vmem:[#allocation7 + $0x28] sm:$0xff] }
 0x2a2   :  { %v461_v49 = vpop.xlane.xlu1 %460 }
 0x2a3   :  { %1040 = vrcp.f32 %v461_v49  ;;  %v731_v49 = vld [vmem:[#allocation7 + $0x20] sm:$0xff] }
 0x2ab   :  { %v412_v50 = vpop.xlane.xlu0 %411 }
 0x2ac   :  { %1042 = vrcp.f32 %v412_v50 }
 0x2af   :  { %v281_v51 = vpop.xlane.xlu1 %280 }
 0x2b0   :  { %1044 = vrcp.f32 %v281_v51  ;;  %v1041_v52 = vpop.eup %1040 }
 0x2b1   :  { %v463_v53 = vmul.f32 %v1041_v52, %v1035_v38 }
 0x2b3   :  { %487 = vperm.xlu0 %1013, %v463_v53   ;;  %471 = vperm.xlu1 %1012, %v463_v53  }
 0x2b7   :  { %1014 = vset.pattern.permute.xlu1 %v1172_v54  ;;  %1021 = vset.pattern.permute.xlu0 %v1173_v55 }
 0x2b8   :  { %503 = vperm.xlu1 %1014, %v463_v53  }
 0x2b9   :  { %v1043_v56 = vpop.eup %1042 }
 0x2ba   :  { %v414_v57 = vmul.f32 %v1043_v56, %v1037_v39 }
 0x2bc   :  { %417 = vperm.xlu0 %1021, %v414_v57   ;;  %1015 = vset.pattern.permute.xlu1 %v1171_v48 }
 0x2bd   :  { %v1045_v58 = vpop.eup %1044  ;;  %422 = vperm.xlu1 %1015, %v414_v57  }
 0x2be   :  { %v283_v59 = vmul.f32 %v1045_v58, %v1039_v40 }
 0x2c0   :  { %1022 = vset.pattern.permute.xlu0 %v1170_v47 }
 0x2c1   :  { %307 = vperm.xlu0 %1022, %v283_v59   ;;  %1016 = vset.pattern.permute.xlu1 %v1170_v47 }
 0x2c2   :  { %438 = vperm.xlu1 %1016, %v414_v57  }
 0x2c5   :  { %1025 = vset.pattern.permute.xlu0 %v1174_v60 }
 0x2c6   :  { %1017 = vset.pattern.permute.xlu1 %v1173_v55 }
 0x2c7   :  { %466 = vperm.xlu1 %1017, %v463_v53  }
 0x2cb   :  { %1018 = vset.pattern.permute.xlu1 %v1174_v60 }
 0x2cc   :  { %481 = vperm.xlu1 %1018, %v463_v53  }
 0x2d0   :  { %1019 = vset.pattern.permute.xlu1 %v1175_v61 }
 0x2d1   :  { %497 = vperm.xlu1 %1019, %v463_v53  }
 0x2d5   :  { %1020 = vset.pattern.permute.xlu1 %v1171_v48 }
 0x2d6   :  { %291 = vperm.xlu1 %1020, %v283_v59  }
 0x2da   :  { %1023 = vset.pattern.permute.xlu1 %v1174_v60 }
 0x2db   :  { %432 = vperm.xlu1 %1023, %v414_v57  }
 0x2df   :  { %1024 = vset.pattern.permute.xlu1 %v1173_v55 }
 0x32e   :  { %v472_v4 = vpop.permute.xlu1 %471  ;;  %v488_v6 = vpop.permute.xlu0 %487 }
 0x32f   :  { %v474_v5 = vmul.f32 %v472_v4, %v1314_v3  ;;  %v490_v8 = vmul.f32 %v488_v6, %v399_v7 }
 0x331   :  { %476 = vrot.lane.b32.xlu1 %v474_v5, %s1176_s15 }
 0x333   :  { %v504_v9 = vpop.permute.xlu1 %503 }
 0x334   :  { %v506_v12 = vmul.f32 %v504_v9, %v1321_v10 }
 0x335   :  { %492 = vrot.lane.b32.xlu1 %v490_v8, %s1176_s15 }
 0x337   :  { %v418_v11 = vpop.permute.xlu0 %417 }
 0x338   :  { %v420_v13 = vmul.f32 %v418_v11, %v399_v7  ;;  %v423_v14 = vpop.permute.xlu1 %422 }
 0x339   :  { %508 = vrot.lane.b32.xlu1 %v506_v12, %s1176_s15  ;;  %v425_v15 = vmul.f32 %v423_v14, %v399_v7 }
 0x33c   :  { %v308_v28 = vpop.permute.xlu0 %307 }
 0x33d   :  { %v439_v16 = vpop.permute.xlu1 %438  ;;  %427 = vrot.lane.b32.xlu1 %v425_v15, %s1176_s15  ;;  %v310_v29 = vmul.f32 %v308_v28, %v1321_v10 }
 0x33e   :  { %v441_v17 = vmul.f32 %v439_v16, %v1321_v10 }
 0x340   :  { %443 = vrot.lane.b32.xlu0 %v441_v17, %s1176_s15 }
 0x341   :  { %286 = vperm.xlu1 %1024, %v283_v59  }
 0x342   :  { %v467_v18 = vpop.permute.xlu1 %466 }
 0x343   :  { %v469_v31 = vmul.f32 %v467_v18, %v1314_v3 }
 0x344   :  { %301 = vperm.xlu0 %1025, %v283_v59  }
 0x345   :  { %1027 = vset.pattern.permute.xlu1 %v1177_v19 }
 0x347   :  { %v482_v20 = vpop.permute.xlu1 %481 }
 0x348   :  { %v484_v23 = vmul.f32 %v482_v20, %v399_v7  ;;  %1026 = vset.pattern.permute.xlu0 %v1178_v21 }
 0x34c   :  { %v498_v25 = vpop.permute.xlu1 %497 }
 0x34d   :  { %v500_v36 = vmul.f32 %v498_v25, %v1321_v10  ;;  %v1179_v25 = vmov 35  }
 0x351   :  { %v292_v26 = vpop.permute.xlu1 %291 }
 0x352   :  { %v294_v27 = vmul.f32 %v292_v26, %v1314_v3 }
 0x354   :  { %296 = vrot.lane.b32.xlu1 %v294_v27, %s1176_s15 }
 0x356   :  { %v433_v30 = vpop.permute.xlu1 %432 }
 0x357   :  { %v435_v44 = vmul.f32 %v433_v30, %v1321_v10 }
 0x358   :  { %312 = vrot.lane.b32.xlu1 %v310_v29, %s1176_s15  ;;  %v1180_v29 = vmov 34  }
 0x3a3   :  { %v477_v32 = vpop.permute.xlu1 %476 }
 0x3a4   :  { %v479_v33 = vadd.f32 %v477_v32, %v469_v31  ;;  %v886_v32 = vld [vmem:[%s1389_s8] ss:$0 sm:$0xff] }
 0x3a6   :  { %v485_v34 = vadd.f32 %v484_v23, %v479_v33 }
 0x3a7   :  { %v493_v35 = vpop.permute.xlu1 %492 }
 0x3a8   :  { %v495_v37 = vadd.f32 %v493_v35, %v485_v34 }
 0x3aa   :  { %v501_v38 = vadd.f32 %v500_v36, %v495_v37 }
 0x3ab   :  { %v509_v39 = vpop.permute.xlu1 %508 }
 0x3ac   :  { %v511_v40 = vadd.f32 %v509_v39, %v501_v38 }
 0x3ae   :  { %965 = vmatmul.mubr.msk.f32.vlgmr.msra.gmra.mxu1 %vm110_vm1, %v511_v40 }
 0x3af   :  { %979 = vmatpush3.msra.mxu1 %v734_v41  ;;  %v428_v43 = vpop.permute.xlu1 %427  ;;  %986 = vmatprep.mubr.msk.f32.mxu1 %vm1168_vm0, %v1167_v0 }
 0x3b0   :  { %v430_v45 = vadd.f32 %v428_v43, %v420_v13  ;;  %980 = vmatprep.subr.mxu1 %v1167_v0 }
 0x3b1   :  { %981 = vmatpush3.msra.mxu1 %v733_v42 }
 0x3b2   :  { %v444_v47 = vpop.permute.xlu0 %443  ;;  %v436_v48 = vadd.f32 %v435_v44, %v430_v45  ;;  %982 = vmatprep.subr.mxu1 %v1167_v0 }
 0x3b3   :  { %983 = vmatpush3.msra.mxu1 %v732_v46 }
 0x3b4   :  { %v446_v50 = vadd.f32 %v444_v47, %v436_v48  ;;  %984 = vmatprep.subr.mxu1 %v1167_v0  ;;  %v891_v0 = vld [vmem:[%s1387_s6 + $0x1] ss:$0 sm:$0xff] }
 0x3b5   :  { %985 = vmatpush3.msra.mxu1 %v731_v49 }
 0x3b6   :  { %987 = vmatmul.mubr.msk.f32.vlgmr.msra.gmra.mxu1 %vm110_vm1, %v446_v50 }
 0x3bc   :  { %v287_v51 = vpop.permute.xlu1 %286 }
 0x3bd   :  { %v289_v53 = vmul.f32 %v287_v51, %v1314_v3  ;;  %v888_v3 = vld [vmem:[%s1387_s6] ss:$0 sm:$0xff] }
 0x3bf   :  { %v302_v52 = vpop.permute.xlu0 %301 }
 0x3c0   :  { %v304_v55 = vmul.f32 %v302_v52, %v1321_v10 }
 0x3c6   :  { %v297_v54 = vpop.permute.xlu1 %296 }
 0x3c7   :  { %v299_v56 = vadd.f32 %v297_v54, %v289_v53 }
 0x3c9   :  { %v305_v57 = vadd.f32 %v304_v55, %v299_v56 }
 0x3ca   :  { %v313_v58 = vpop.permute.xlu1 %312 }
 0x3cb   :  { %v315_v59 = vadd.f32 %v313_v58, %v305_v57 }
 0x3cd   :  { %976 = vmatmul.mubr.msk.f32.vlgmr.msra.gmra.mxu0 %vm110_vm1, %v315_v59 }
 0x46e   :  { %v1349_v60 = vpop.f32.mrf.mxu1 }
 0x46f   :  { %v593_v34 = vadd.f32 %v886_v32, %v1349_v60 }
 0x470   :  { %v966_v61 = vpop.f32.mrf.mxu1 }
 0x471   :  { %v596_v37 = vmax.f32 %v593_v34, 0.0 }
 0x476   :  { %v812_v62 = vpop.f32.mrf.mxu1 }
 0x477   :  { %v1354_v63 = vadd.f32 %v891_v0, %v812_v62 }
 0x478   :  { %v988_v1 = vpop.f32.mrf.mxu1 }
 0x479   :  { %v817_v2 = vsel %vm682_vm6, %v1354_v63, -inf  ;;  %v816_v42 = vmax.f32 %v1354_v63, 0.0 }
 0x47a   :  { %818 = vmax.xlane.f32.xlu0 %v817_v2 }
 0x48d   :  { %v677_v4 = vpop.f32.mrf.mxu0 }
 0x48e   :  { %v1360_v5 = vadd.f32 %v888_v3, %v677_v4 }
 0x48f   :  { %v977_v6 = vpop.f32.mrf.mxu0 }
 0x490   :  { %v683_v7 = vsel %vm682_vm6, %v1360_v5, -inf  ;;  %v681_v33 = vmax.f32 %v1360_v5, 0.0 }
 0x491   :  { %684 = vmax.xlane.f32.xlu1 %v683_v7 }
 0x503   :  { %v819_v8 = vpop.xlane.xlu0 %818 }
 0x504   :  { %v820_v9 = vsub.f32 %v1354_v63, %v819_v8 }
 0x506   :  { %v821_v10 = vmul.f32 1.442695, %v820_v9 }
 0x508   :  { %1046 = vpow2.f32 %v821_v10 }
 0x515   :  { %v1047_v11 = vpop.eup %1046 }
 0x516   :  { %824 = vrot.lane.b32.xlu0 %v1047_v11, %s1176_s15 }
 0x51a   :  { %v685_v12 = vpop.xlane.xlu1 %684 }
 0x51b   :  { %v686_v13 = vsub.f32 %v1360_v5, %v685_v12 }
 0x51d   :  { %v687_v14 = vmul.f32 1.442695, %v686_v13 }
 0x51f   :  { %1048 = vpow2.f32 %v687_v14 }
 0x52c   :  { %v1049_v15 = vpop.eup %1048 }
 0x52d   :  { %690 = vrot.lane.b32.xlu1 %v1049_v15, %s1176_s15 }
 0x588   :  { %v825_v16 = vpop.permute.xlu0 %824 }
 0x589   :  { %v827_v17 = vsel %vm278_vm5, %v825_v16, 0.0 }
 0x58a   :  { %828 = vadd.xlane.f32.xlu0 %v827_v17 }
 0x59f   :  { %v691_v18 = vpop.permute.xlu1 %690 }
 0x5a0   :  { %v693_v20 = vsel %vm278_vm5, %v691_v18, 0.0 }
 0x5a1   :  { %694 = vadd.xlane.f32.xlu1 %v693_v20 }
 0x613   :  { %v829_v22 = vpop.xlane.xlu0 %828 }
 0x614   :  { %1050 = vrcp.f32 %v829_v22 }
 0x621   :  { %v1051_v23 = vpop.eup %1050 }
 0x622   :  { %v831_v24 = vmul.f32 %v1051_v23, %v1047_v11 }
 0x624   :  { %839 = vperm.xlu1 %1027, %v831_v24  }
 0x628   :  { %1028 = vset.pattern.permute.xlu1 %v1179_v25 }
 0x629   :  { %855 = vperm.xlu1 %1028, %v831_v24  }
 0x62a   :  { %v695_v26 = vpop.xlane.xlu1 %694 }
 0x62b   :  { %1052 = vrcp.f32 %v695_v26 }
 0x62d   :  { %1029 = vset.pattern.permute.xlu1 %v1177_v19 }
 0x638   :  { %v1053_v27 = vpop.eup %1052 }
 0x639   :  { %v697_v28 = vmul.f32 %v1053_v27, %v1049_v15 }
 0x63b   :  { %705 = vperm.xlu1 %1029, %v697_v28   ;;  %700 = vperm.xlu0 %1026, %v697_v28  }
 0x63f   :  { %1030 = vset.pattern.permute.xlu1 %v1180_v29  ;;  %834 = vperm.xlu0 %1026, %v831_v24  }
 0x640   :  { %715 = vperm.xlu1 %1030, %v697_v28  }
 0x643   :  { %1032 = vset.pattern.permute.xlu0 %v1180_v29 }
 0x644   :  { %1031 = vset.pattern.permute.xlu1 %v1179_v25  ;;  %849 = vperm.xlu0 %1032, %v831_v24  }
 0x645   :  { %721 = vperm.xlu1 %1031, %v697_v28  }
 0x648   :  { %1033 = vset.pattern.permute.xlu0 %v1179_v25 }
 0x69f   :  { %v840_v30 = vpop.permute.xlu1 %839 }
 0x6a0   :  { %v842_v43 = vmul.f32 %v840_v30, %v816_v42 }
 0x6a4   :  { %v856_v31 = vpop.permute.xlu1 %855 }
 0x6a5   :  { %v858_v44 = vmul.f32 %v856_v31, %v596_v37 }
 0x6b6   :  { %v706_v35 = vpop.permute.xlu1 %705  ;;  %v701_v45 = vpop.permute.xlu0 %700 }
 0x6b7   :  { %v708_v36 = vmul.f32 %v706_v35, %v681_v33  ;;  %v703_v46 = vmul.f32 %v701_v45, %v681_v33 }
 0x6b9   :  { %710 = vrot.lane.b32.xlu1 %v708_v36, %s1181_s21 }
 0x6ba   :  { %v835_v50 = vpop.permute.xlu0 %834 }
 0x6bb   :  { %v716_v38 = vpop.permute.xlu1 %715  ;;  %v837_v54 = vmul.f32 %v835_v50, %v816_v42 }
 0x6bc   :  { %v718_v39 = vmul.f32 %v716_v38, %v596_v37 }
 0x6bf   :  { %v850_v53 = vpop.permute.xlu0 %849 }
 0x6c0   :  { %v722_v40 = vpop.permute.xlu1 %721  ;;  %v852_v56 = vmul.f32 %v850_v53, %v596_v37 }
 0x6c1   :  { %v724_v41 = vmul.f32 %v722_v40, %v596_v37 }
 0x6c3   :  { %726 = vrot.lane.b32.xlu1 %v724_v41, %s1181_s21 }
 0x6c7   :  { %844 = vrot.lane.b32.xlu1 %v842_v43, %s1181_s21 }
 0x6cb   :  { %860 = vrot.lane.b32.xlu1 %v858_v44, %s1181_s21 }
 0x72b   :  { %v711_v47 = vpop.permute.xlu1 %710 }
 0x72c   :  { %v713_v48 = vadd.f32 %v711_v47, %v703_v46 }
 0x72e   :  { %v719_v49 = vadd.f32 %v718_v39, %v713_v48 }
 0x735   :  { %v727_v51 = vpop.permute.xlu1 %726 }
 0x736   :  { %v729_v52 = vadd.f32 %v727_v51, %v719_v49 }
 0x738   :  { %865 = vst.msk [vmem:[%s1390_s9] sm:$0xff] %vm864_vm7, %v729_v52 }
 0x739   :  { %v845_v55 = vpop.permute.xlu1 %844 }
 0x73a   :  { %v847_v57 = vadd.f32 %v845_v55, %v837_v54 }
 0x73c   :  { %v853_v58 = vadd.f32 %v852_v56, %v847_v57 }
 0x73d   :  { %v861_v59 = vpop.permute.xlu1 %860 }
 0x73e   :  { %v863_v60 = vadd.f32 %v861_v59, %v853_v58 }
 0x740   :  { %867 = vrot.lane.b32.xlu1 %v863_v60, %s1182_s1 }
 0x7b2   :  { %v868_v61 = vpop.permute.xlu1 %867 }
 0x7b3   :  { %871 = vst.msk [vmem:[%s1390_s9] sm:$0xff] %vm870_vm8, %v868_v61 }
 0x7b4   :  { %876 = vsyncpa [#allocation3], 1 }
 0x7b5   :  { %877 = vsyncpa [#allocation5], 1 }
 0x7b6   :  { %878 = vsyncpa [#allocation8], 1 }

</bundles_post_ra>
